<compile_context>
chip_gen: v7x
topology: tpu7x:2x2x1
jax: 0.10.0
libtpu: 0.0.40
codegen_flags: <defaults>
</compile_context>

<pallas_src>
import functools

import jax
import jax.numpy as jnp
from jax.experimental import pallas as pl
from jax.experimental.pallas import tpu as pltpu

MARGIN = 0.1   # module __init__ hardcodes self.margin = 0.1 regardless of arg
_BIG = 1e30


def _round_up(x, m):
    return (x + m - 1) // m * m


def _vmem_capacity_bytes():
    """Per-core VMEM capacity; conservative (v7x) fallback if query fails."""
    try:
        info = pltpu.get_tpu_info()
        cap = getattr(info, "vmem_capacity_bytes", None)
        if cap:
            return int(cap)
    except Exception:
        pass
    return 64 * 1024 * 1024


def _pick_tile_and_vmem(n_pad, d_pad):
    """Generation-aware row-tile size and vmem_limit_bytes."""
    cap = _vmem_capacity_bytes()
    # Leave ~25% headroom for Mosaic internal scratch; cap at 112 MiB even on
    # 128-MiB parts.  v7x (64 MiB/TC) -> 48 MiB; v5e/v6e (128 MiB) -> 96 MiB.
    budget = min((cap * 3) // 4, 112 * 1024 * 1024)

    def footprint(tm):
        xt = d_pad * n_pad * 2            # bf16 xT, single-buffered
        x_tile = 2 * tm * d_pad * 2       # bf16 row tile, double-buffered
        temps = 9 * tm * n_pad * 4        # sim + masks/selects/wheres (f32-equiv)
        rows = 4 * 2 * n_pad * 4          # label rows + bias row (+ buffers)
        out = 2 * 8 * 128 * 4
        return xt + x_tile + temps + rows + out

    # Prefer TM=256 only when it fits AND still leaves >= 2 row tiles so both
    # v7x TensorCores get work; otherwise TM=128.
    tm = 128
    if n_pad % 256 == 0 and n_pad // 256 >= 2 and footprint(256) <= budget:
        tm = 256
    return tm, int(budget)


def hard_mining_kernel(x_ref, xt_ref, tcol_ref, trow_ref, bias_ref, out_ref,
                       *, n_valid):
    """One row-tile of the hard-mining loss.

    x_ref    : (TM, Dp)    bf16 row tile of the (padded) embeddings
    xt_ref   : (Dp, Np)    bf16 full transposed embeddings (grid-invariant)
    tcol_ref : (TM, 1)     i32  labels of this row tile
    trow_ref : (1, Np)     i32  labels of all columns (grid-invariant)
    bias_ref : (1, Np)     f32  0 for valid columns, -BIG for padded columns
    out_ref  : (1, 8, 128) f32  per-tile partials:
               [0,0,0] = sum of row_loss over valid rows in this tile
               [0,0,1] = number of skipped ("continue") rows in this tile
    """
    tm = x_ref.shape[0]
    n_pad = xt_ref.shape[1]
    i = pl.program_id(0)

    # Single native bf16 MXU pass, f32 accumulation.
    sim = jnp.dot(x_ref[...], xt_ref[...], preferred_element_type=jnp.float32)

    if n_valid < n_pad:
        # -BIG on padded columns drops them from max_neg / neg_sel / n_sim;
        # padded labels never match real labels so they never become positives.
        sim = sim + bias_ref[...]

    col_ids = jax.lax.broadcasted_iota(jnp.int32, (tm, n_pad), 1)
    row_ids = jax.lax.broadcasted_iota(jnp.int32, (tm, 1), 0) + i * tm

    same = tcol_ref[...] == trow_ref[...]                  # (TM, Np) bool
    # Index-based anchor exclusion replaces the reference's `pos_pair_ < 1`
    # value test: robust to MXU/bf16 rounding, no diag-pin pass needed.
    pos_mask = jnp.logical_and(same, col_ids != row_ids)
    neg_mask = jnp.logical_not(same)

    big = jnp.float32(_BIG)
    sim_pos = jnp.where(pos_mask, sim, big)                # +BIG sentinel
    sim_neg = jnp.where(neg_mask, sim, -big)               # -BIG sentinel
    min_pos = jnp.min(sim_pos, axis=-1, keepdims=True)
    max_neg = jnp.max(sim_neg, axis=-1, keepdims=True)

    margin = jnp.float32(MARGIN)
    # Sentinels make an extra logical_and with pos_mask/neg_mask redundant:
    # non-positives (+BIG) can never be < max_neg + margin, non-negatives
    # (-BIG) can never be > min_pos - margin.
    pos_sel = sim_pos < max_neg + margin
    neg_sel = sim_neg > min_pos - margin

    zero = jnp.float32(0.0)
    one = jnp.float32(1.0)
    pc = jnp.sum(jnp.where(pos_sel, one, zero), axis=-1, keepdims=True)
    nc = jnp.sum(jnp.where(neg_sel, one, zero), axis=-1, keepdims=True)
    p_sim = jnp.sum(jnp.where(pos_sel, sim_pos, zero), axis=-1, keepdims=True)
    n_sim = jnp.sum(jnp.where(neg_sel, sim_neg, zero), axis=-1, keepdims=True)

    # mean(1 - pos_pair) + mean(neg_pair); rows with no selected negative are
    # skipped (torch `continue`) and counted for `prec`.  Whenever nc > 0 the
    # hardest positive satisfies pos_sel, so pc >= 1 on every valid row.
    row_loss = (pc - p_sim) / pc + n_sim / nc
    valid = nc > 0.5

    if n_valid < n_pad:                                    # drop padded rows
        row_ok = row_ids < n_valid
        valid_row = jnp.logical_and(valid, row_ok)
        skip_row = jnp.logical_and(jnp.logical_not(valid), row_ok)
    else:
        valid_row = valid
        skip_row = jnp.logical_not(valid)

    partial_loss = jnp.sum(jnp.where(valid_row, row_loss, zero))
    partial_skip = jnp.sum(jnp.where(skip_row, one, zero))

    # Lane-dense (8, 128) output slab: [0,0]=loss partial, [0,1]=skip partial.
    sub = jax.lax.broadcasted_iota(jnp.int32, (8, 128), 0)
    lane = jax.lax.broadcasted_iota(jnp.int32, (8, 128), 1)
    first = sub == 0
    slab = jnp.where(jnp.logical_and(first, lane == 0), partial_loss,
                     jnp.where(jnp.logical_and(first, lane == 1),
                               partial_skip, zero))
    out_ref[0] = slab


def hard_mining_loss(inputs, targets):
    """JAX/Pallas equivalent of HardMiningLoss.forward.

    Returns (loss, prec, mean_pos_sim, mean_neg_sim): loss is divided by n
    including skipped rows, prec is the fraction of skipped rows, and the
    mean_*_sim values are stats of the LAST row, matching the PyTorch module.
    """
    inputs = jnp.asarray(inputs, jnp.float32)
    targets = jnp.asarray(targets, jnp.int32)
    n, d = inputs.shape

    n_pad = _round_up(n, 128)
    d_pad = _round_up(d, 128)
    tm, vmem_limit = _pick_tile_and_vmem(n_pad, d_pad)
    num_tiles = n_pad // tm

    # bf16 storage: halves xT residency and all x/xT DMA; matmul accumulates
    # in f32 and anchor exclusion is index-based, so no threshold sensitivity.
    x16 = jnp.pad(inputs.astype(jnp.bfloat16), ((0, n_pad - n), (0, d_pad - d)))
    xt16 = x16.T                                           # (d_pad, n_pad)

    pad_label = jnp.iinfo(jnp.int32).min                   # never equals a real label
    t_pad = jnp.pad(targets, (0, n_pad - n), constant_values=pad_label)
    t_col = t_pad.reshape(n_pad, 1)
    t_row = t_pad.reshape(1, n_pad)

    col_bias = jnp.where(jnp.arange(n_pad) < n,
                         jnp.float32(0.0), jnp.float32(-_BIG)).reshape(1, n_pad)

    kernel = functools.partial(hard_mining_kernel, n_valid=n)

    partials = pl.pallas_call(
        kernel,
        out_shape=jax.ShapeDtypeStruct((num_tiles, 8, 128), jnp.float32),
        grid_spec=pltpu.PrefetchScalarGridSpec(
            num_scalar_prefetch=0,
            grid=(num_tiles,),
            in_specs=[
                # Row tile of x: streamed, default double-buffering.
                pl.BlockSpec((tm, d_pad), lambda i: (i, 0)),
                # Grid-invariant residents: single-buffered (block index never
                # changes, double-buffering them only burns VMEM).
                pl.BlockSpec((d_pad, n_pad), lambda i: (0, 0),
                             pipeline_mode=pl.Buffered(1)),
                pl.BlockSpec((tm, 1), lambda i: (i, 0)),
                pl.BlockSpec((1, n_pad), lambda i: (0, 0),
                             pipeline_mode=pl.Buffered(1)),
                pl.BlockSpec((1, n_pad), lambda i: (0, 0),
                             pipeline_mode=pl.Buffered(1)),
            ],
            out_specs=pl.BlockSpec((1, 8, 128), lambda i: (i, 0, 0)),
        ),
        compiler_params=pltpu.CompilerParams(
            dimension_semantics=("parallel",),
            vmem_limit_bytes=vmem_limit,
        ),
    )(x16, xt16, t_col, t_row, col_bias)

    loss = jnp.sum(partials[:, 0, 0]) / n
    prec = jnp.sum(partials[:, 0, 1]) / n

    # Last-iteration stats of the reference loop (row n-1 only): O(n*d) glue,
    # kept in f32 with value-based self-exclusion to mirror the reference.
    sim_last = jnp.dot(inputs, inputs[n - 1],
                       precision=jax.lax.Precision.HIGHEST)       # (n,)
    sim_last = sim_last.at[n - 1].set(1.0)                        # pin self-sim
    same_last = targets == targets[n - 1]
    pos_m = jnp.logical_and(same_last, sim_last < 1.0)
    neg_m = jnp.logical_not(same_last)
    mean_pos_sim = (jnp.sum(jnp.where(pos_m, sim_last, 0.0))
                    / jnp.sum(pos_m.astype(jnp.float32)))
    mean_neg_sim = (jnp.sum(jnp.where(neg_m, sim_last, 0.0))
                    / jnp.sum(neg_m.astype(jnp.float32)))

    return loss, prec, mean_pos_sim, mean_neg_sim


if __name__ == "__main__":
    key = jax.random.PRNGKey(0)
    n, d = 8, 32

    # L2-normalized embeddings (the module assumes self-similarity ~ 1).
    x = jax.random.normal(key, (n, d), dtype=jnp.float32)
    x = x / jnp.linalg.norm(x, axis=-1, keepdims=True)

    # 4 classes, 2 samples each -> every anchor has positives and negatives.
    targets = jnp.array([0, 0, 1, 1, 2, 2, 3, 3], dtype=jnp.int32)

    fn = jax.jit(hard_mining_loss)
    loss, prec, mean_pos_sim, mean_neg_sim = fn(x, targets)
    jax.block_until_ready((loss, prec, mean_pos_sim, mean_neg_sim))
    print("KERNEL_OK")
</pallas_src>

<mosaic_0001>
module attributes {stable_mosaic.version = 11 : i64} {
  func.func @hard_mining_kernel(%arg0: i32, %arg1: memref<128x128xbf16, #tpu.memory_space<vmem>>, %arg2: memref<128x128xbf16, #tpu.memory_space<vmem>>, %arg3: memref<128x1xi32, #tpu.memory_space<vmem>>, %arg4: memref<1x128xi32, #tpu.memory_space<vmem>>, %arg5: memref<1x128xf32, #tpu.memory_space<vmem>>, %arg6: memref<1x8x128xf32, #tpu.memory_space<vmem>>) attributes {dimension_semantics = [#tpu.dimension_semantics<parallel>], iteration_bounds = array<i64: 1>, scalar_prefetch = 0 : i64, scratch_operands = 0 : i64, tpu.core_type = #tpu.core_type<tc>, window_params = [{transform_indices = @transform_0, window_bounds = array<i64: 128, 128>}, {pipeline_mode = #tpu.pipeline_mode<synchronous>, transform_indices = @transform_1, window_bounds = array<i64: 128, 128>}, {transform_indices = @transform_2, window_bounds = array<i64: 128, 1>}, {pipeline_mode = #tpu.pipeline_mode<synchronous>, transform_indices = @transform_3, window_bounds = array<i64: 1, 128>}, {pipeline_mode = #tpu.pipeline_mode<synchronous>, transform_indices = @transform_4, window_bounds = array<i64: 1, 128>}, {transform_indices = @transform_5, window_bounds = array<i64: 1, 8, 128>}]} {
    %c0 = arith.constant 0 : index
    %c0_0 = arith.constant 0 : index
    %0 = vector.load %arg1[%c0, %c0_0] : memref<128x128xbf16, #tpu.memory_space<vmem>>, vector<128x128xbf16>
    %c0_1 = arith.constant 0 : index
    %c0_2 = arith.constant 0 : index
    %1 = vector.load %arg2[%c0_1, %c0_2] : memref<128x128xbf16, #tpu.memory_space<vmem>>, vector<128x128xbf16>
    %cst = arith.constant dense<0.000000e+00> : vector<128x128xf32>
    %2 = tpu.matmul %0, %1, %cst {dimension_numbers = #tpu.dot_dimension_numbers<[1], [0], [0], [1], [0, 0, 1, 1], [], []>} : vector<128x128xbf16>, vector<128x128xbf16>, vector<128x128xf32> -> vector<128x128xf32>
    %c0_3 = arith.constant 0 : index
    %c0_4 = arith.constant 0 : index
    %3 = vector.load %arg5[%c0_3, %c0_4] : memref<1x128xf32, #tpu.memory_space<vmem>>, vector<1x128xf32>
    %4 = vector.broadcast %3 : vector<1x128xf32> to vector<128x128xf32>
    %5 = arith.addf %2, %4 : vector<128x128xf32>
    %6 = tpu.iota {dimensions = array<i32: 1>} : vector<128x128xi32>
    %7 = tpu.iota {dimensions = array<i32: 0>} : vector<128x1xi32>
    %c128_i32 = arith.constant 128 : i32
    %8 = arith.muli %arg0, %c128_i32 : i32
    %9 = vector.broadcast %8 : i32 to vector<128x1xi32>
    %10 = arith.addi %7, %9 : vector<128x1xi32>
    %c0_5 = arith.constant 0 : index
    %c0_6 = arith.constant 0 : index
    %11 = vector.load %arg3[%c0_5, %c0_6] : memref<128x1xi32, #tpu.memory_space<vmem>>, vector<128x1xi32>
    %c0_7 = arith.constant 0 : index
    %c0_8 = arith.constant 0 : index
    %12 = vector.load %arg4[%c0_7, %c0_8] : memref<1x128xi32, #tpu.memory_space<vmem>>, vector<1x128xi32>
    %13 = vector.broadcast %11 : vector<128x1xi32> to vector<128x128xi32>
    %14 = vector.broadcast %12 : vector<1x128xi32> to vector<128x128xi32>
    %15 = arith.cmpi eq, %13, %14 : vector<128x128xi32>
    %16 = vector.broadcast %10 : vector<128x1xi32> to vector<128x128xi32>
    %17 = arith.cmpi ne, %6, %16 : vector<128x128xi32>
    %18 = arith.andi %15, %17 : vector<128x128xi1>
    %cst_9 = arith.constant dense<true> : vector<128x128xi1>
    %19 = arith.xori %15, %cst_9 : vector<128x128xi1>
    %cst_10 = arith.constant 1.000000e+30 : f32
    %20 = vector.broadcast %cst_10 : f32 to vector<128x128xf32>
    %21 = arith.select %18, %5, %20 : vector<128x128xi1>, vector<128x128xf32>
    %cst_11 = arith.constant 0.000000e+00 : f32
    %cst_12 = arith.constant 1.000000e+30 : f32
    %22 = arith.subf %cst_11, %cst_12 : f32
    %23 = vector.broadcast %22 : f32 to vector<128x128xf32>
    %24 = arith.select %19, %5, %23 : vector<128x128xi1>, vector<128x128xf32>
    %cst_13 = arith.constant dense<0x7F800000> : vector<128xf32>
    %25 = vector.multi_reduction <minimumf>, %21, %cst_13 [1] : vector<128x128xf32> to vector<128xf32>
    %26 = vector.shape_cast %25 : vector<128xf32> to vector<128x1xf32>
    %cst_14 = arith.constant dense<0xFF800000> : vector<128xf32>
    %27 = vector.multi_reduction <maximumf>, %24, %cst_14 [1] : vector<128x128xf32> to vector<128xf32>
    %28 = vector.shape_cast %27 : vector<128xf32> to vector<128x1xf32>
    %cst_15 = arith.constant 1.000000e-01 : f32
    %29 = vector.broadcast %cst_15 : f32 to vector<128x1xf32>
    %30 = arith.addf %28, %29 : vector<128x1xf32>
    %31 = vector.broadcast %30 : vector<128x1xf32> to vector<128x128xf32>
    %32 = arith.cmpf olt, %21, %31 : vector<128x128xf32>
    %cst_16 = arith.constant 1.000000e-01 : f32
    %33 = vector.broadcast %cst_16 : f32 to vector<128x1xf32>
    %34 = arith.subf %26, %33 : vector<128x1xf32>
    %35 = vector.broadcast %34 : vector<128x1xf32> to vector<128x128xf32>
    %36 = arith.cmpf ogt, %24, %35 : vector<128x128xf32>
    %cst_17 = arith.constant 1.000000e+00 : f32
    %cst_18 = arith.constant 0.000000e+00 : f32
    %37 = vector.broadcast %cst_17 : f32 to vector<128x128xf32>
    %38 = vector.broadcast %cst_18 : f32 to vector<128x128xf32>
    %39 = arith.select %32, %37, %38 : vector<128x128xi1>, vector<128x128xf32>
    %cst_19 = arith.constant dense<0.000000e+00> : vector<128xf32>
    %40 = vector.multi_reduction <add>, %39, %cst_19 [1] : vector<128x128xf32> to vector<128xf32>
    %41 = vector.shape_cast %40 : vector<128xf32> to vector<128x1xf32>
    %cst_20 = arith.constant 1.000000e+00 : f32
    %cst_21 = arith.constant 0.000000e+00 : f32
    %42 = vector.broadcast %cst_20 : f32 to vector<128x128xf32>
    %43 = vector.broadcast %cst_21 : f32 to vector<128x128xf32>
    %44 = arith.select %36, %42, %43 : vector<128x128xi1>, vector<128x128xf32>
    %cst_22 = arith.constant dense<0.000000e+00> : vector<128xf32>
    %45 = vector.multi_reduction <add>, %44, %cst_22 [1] : vector<128x128xf32> to vector<128xf32>
    %46 = vector.shape_cast %45 : vector<128xf32> to vector<128x1xf32>
    %cst_23 = arith.constant 0.000000e+00 : f32
    %47 = vector.broadcast %cst_23 : f32 to vector<128x128xf32>
    %48 = arith.select %32, %21, %47 : vector<128x128xi1>, vector<128x128xf32>
    %cst_24 = arith.constant dense<0.000000e+00> : vector<128xf32>
    %49 = vector.multi_reduction <add>, %48, %cst_24 [1] : vector<128x128xf32> to vector<128xf32>
    %50 = vector.shape_cast %49 : vector<128xf32> to vector<128x1xf32>
    %cst_25 = arith.constant 0.000000e+00 : f32
    %51 = vector.broadcast %cst_25 : f32 to vector<128x128xf32>
    %52 = arith.select %36, %24, %51 : vector<128x128xi1>, vector<128x128xf32>
    %cst_26 = arith.constant dense<0.000000e+00> : vector<128xf32>
    %53 = vector.multi_reduction <add>, %52, %cst_26 [1] : vector<128x128xf32> to vector<128xf32>
    %54 = vector.shape_cast %53 : vector<128xf32> to vector<128x1xf32>
    %55 = arith.subf %41, %50 : vector<128x1xf32>
    %56 = arith.divf %55, %41 : vector<128x1xf32>
    %57 = arith.divf %54, %46 : vector<128x1xf32>
    %58 = arith.addf %56, %57 : vector<128x1xf32>
    %cst_27 = arith.constant 5.000000e-01 : f32
    %59 = vector.broadcast %cst_27 : f32 to vector<128x1xf32>
    %60 = arith.cmpf ogt, %46, %59 : vector<128x1xf32>
    %c8_i32 = arith.constant 8 : i32
    %61 = vector.broadcast %c8_i32 : i32 to vector<128x1xi32>
    %62 = arith.cmpi slt, %10, %61 : vector<128x1xi32>
    %63 = arith.andi %60, %62 : vector<128x1xi1>
    %cst_28 = arith.constant dense<true> : vector<128x1xi1>
    %64 = arith.xori %60, %cst_28 : vector<128x1xi1>
    %65 = arith.andi %64, %62 : vector<128x1xi1>
    %cst_29 = arith.constant 0.000000e+00 : f32
    %66 = vector.broadcast %cst_29 : f32 to vector<128x1xf32>
    %67 = arith.select %63, %58, %66 : vector<128x1xi1>, vector<128x1xf32>
    %68 = vector.shape_cast %67 : vector<128x1xf32> to vector<1x128x1xf32>
    %cst_30 = arith.constant dense<0.000000e+00> : vector<1xf32>
    %69 = vector.multi_reduction <add>, %68, %cst_30 [1, 2] : vector<1x128x1xf32> to vector<1xf32>
    %70 = vector.shape_cast %69 : vector<1xf32> to vector<1x1x1xf32>
    %71 = vector.extract %70[0, 0, 0] : f32 from vector<1x1x1xf32>
    %cst_31 = arith.constant 1.000000e+00 : f32
    %cst_32 = arith.constant 0.000000e+00 : f32
    %72 = vector.broadcast %cst_31 : f32 to vector<128x1xf32>
    %73 = vector.broadcast %cst_32 : f32 to vector<128x1xf32>
    %74 = arith.select %65, %72, %73 : vector<128x1xi1>, vector<128x1xf32>
    %75 = vector.shape_cast %74 : vector<128x1xf32> to vector<1x128x1xf32>
    %cst_33 = arith.constant dense<0.000000e+00> : vector<1xf32>
    %76 = vector.multi_reduction <add>, %75, %cst_33 [1, 2] : vector<1x128x1xf32> to vector<1xf32>
    %77 = vector.shape_cast %76 : vector<1xf32> to vector<1x1x1xf32>
    %78 = vector.extract %77[0, 0, 0] : f32 from vector<1x1x1xf32>
    %79 = tpu.iota {dimensions = array<i32: 0>} : vector<8x128xi32>
    %80 = tpu.iota {dimensions = array<i32: 1>} : vector<8x128xi32>
    %c0_i32 = arith.constant 0 : i32
    %81 = vector.broadcast %c0_i32 : i32 to vector<8x128xi32>
    %82 = arith.cmpi eq, %79, %81 : vector<8x128xi32>
    %c0_i32_34 = arith.constant 0 : i32
    %83 = vector.broadcast %c0_i32_34 : i32 to vector<8x128xi32>
    %84 = arith.cmpi eq, %80, %83 : vector<8x128xi32>
    %85 = arith.andi %82, %84 : vector<8x128xi1>
    %c1_i32 = arith.constant 1 : i32
    %86 = vector.broadcast %c1_i32 : i32 to vector<8x128xi32>
    %87 = arith.cmpi eq, %80, %86 : vector<8x128xi32>
    %88 = arith.andi %82, %87 : vector<8x128xi1>
    %cst_35 = arith.constant 0.000000e+00 : f32
    %89 = vector.broadcast %78 : f32 to vector<8x128xf32>
    %90 = vector.broadcast %cst_35 : f32 to vector<8x128xf32>
    %91 = arith.select %88, %89, %90 : vector<8x128xi1>, vector<8x128xf32>
    %92 = vector.broadcast %71 : f32 to vector<8x128xf32>
    %93 = arith.select %85, %92, %91 : vector<8x128xi1>, vector<8x128xf32>
    %c0_36 = arith.constant 0 : index
    %c0_37 = arith.constant 0 : index
    %c0_38 = arith.constant 0 : index
    %94 = vector.load %arg6[%c0_36, %c0_37, %c0_38] : memref<1x8x128xf32, #tpu.memory_space<vmem>>, vector<1x8x128xf32>
    %95 = vector.shape_cast %94 : vector<1x8x128xf32> to vector<8x128xf32>
    %96 = vector.shape_cast %93 : vector<8x128xf32> to vector<1x8x128xf32>
    tpu.vector_store %arg6[%c0_36, %c0_37, %c0_38], %96 {strides = array<i32>} : memref<1x8x128xf32, #tpu.memory_space<vmem>>, vector<1x8x128xf32>,
    return
  }
  func.func @transform_0(%arg0: i32) -> (i32, i32) {
    %c0_i32 = arith.constant 0 : i32
    %c0_i32_0 = arith.constant 0 : i32
    return %arg0, %c0_i32 : i32, i32
  }
  func.func @transform_1(%arg0: i32) -> (i32, i32) {
    %c0_i32 = arith.constant 0 : i32
    %c0_i32_0 = arith.constant 0 : i32
    %c0_i32_1 = arith.constant 0 : i32
    return %c0_i32, %c0_i32_0 : i32, i32
  }
  func.func @transform_2(%arg0: i32) -> (i32, i32) {
    %c0_i32 = arith.constant 0 : i32
    %c0_i32_0 = arith.constant 0 : i32
    return %arg0, %c0_i32 : i32, i32
  }
  func.func @transform_3(%arg0: i32) -> (i32, i32) {
    %c0_i32 = arith.constant 0 : i32
    %c0_i32_0 = arith.constant 0 : i32
    %c0_i32_1 = arith.constant 0 : i32
    return %c0_i32, %c0_i32_0 : i32, i32
  }
  func.func @transform_4(%arg0: i32) -> (i32, i32) {
    %c0_i32 = arith.constant 0 : i32
    %c0_i32_0 = arith.constant 0 : i32
    %c0_i32_1 = arith.constant 0 : i32
    return %c0_i32, %c0_i32_0 : i32, i32
  }
  func.func @transform_5(%arg0: i32) -> (i32, i32, i32) {
    %c0_i32 = arith.constant 0 : i32
    %c0_i32_0 = arith.constant 0 : i32
    %c0_i32_1 = arith.constant 0 : i32
    return %arg0, %c0_i32, %c0_i32_0 : i32, i32, i32
  }
}

</mosaic_0001>

<bundles_post_ra>
// kernel: hard_mining_loss.1
= control target key start
LH: loop header
LB: loop body
LE: loop exit
PB: predicated region body
PF: predicated region fallthrough
CT: control target
= control target key end

     0   :  { %v1204_v1 = vmov 0   ;;  %v253_v12 = vlaneseq  ;;  %vm1205_vm3 = vmmov 1   ;;  %v1206_v29 = vmov 0.0   ;;  %s1308_s1 = inlined_call_operand.vmem [shape: bf16[128,128], index: 1, kind: input, shape index: {}]   ;;  %s1309_s0 = inlined_call_operand.vmem [shape: bf16[128,128], index: 0, kind: input, shape index: {}]   ;;  %s1310_s2 = inlined_call_operand.vmem [shape: s32[128,1], index: 2, kind: input, shape index: {}]   ;;  %s1311_s3 = inlined_call_operand.vmem [shape: s32[1,128], index: 3, kind: input, shape index: {}]   ;;  %s1312_s4 = inlined_call_operand.vmem [shape: f32[1,128], index: 4, kind: input, shape index: {}]   ;;  %s1313_s5 = inlined_call_operand.vmem [shape: f32[1,8,128], index: 5, kind: output, shape index: {}]  }
   0x1   :  { %v1184_v0 = vld [vmem:[%s1308_s1] sm:$0xff]   ;;  %1183 = vset.pattern.permute.xlu0 %v1204_v1  ;;  %v1185_v2 = vld [vmem:[%s1308_s1 + $0x8] sm:$0xff]   ;;  %v1186_v3 = vld [vmem:[%s1308_s1 + $0x10] sm:$0xff]   ;;  %vm967_vm9 = vcmask 7168  }
   0x2   :  { %1128 = vmatprep.subr.bf16.mxu0 %v1184_v0  ;;  %1160 = vmatprep.subr.bf16.mxu1 %v1184_v0  ;;  %v1187_v4 = vld [vmem:[%s1308_s1 + $0x18] sm:$0xff]   ;;  %v1192_v5 = vld [vmem:[%s1309_s0] sm:$0xff]   ;;  %v1189_v8 = vld [vmem:[%s1308_s1 + $0x28] sm:$0xff]   ;;  %v1270_v13 = vand.u32 127, %v253_v12  ;;  %v1272_v14 = vshrl.u32 %v253_v12, 7 }
   0x3   :  { %1129 = vmatpush3.bf16.msra.mxu0 %v1184_v0  ;;  %1168 = vmatpush3.bf16.msra.mxu1 %v1184_v0  ;;  %v1188_v6 = vld [vmem:[%s1308_s1 + $0x20] sm:$0xff]   ;;  %v1190_v9 = vld [vmem:[%s1308_s1 + $0x30] sm:$0xff]   ;;  %v1191_v10 = vld [vmem:[%s1308_s1 + $0x38] sm:$0xff]  }
   0x4   :  { %1130 = vmatprep.subr.bf16.mxu0 %v1185_v2  ;;  %1161 = vmatprep.subr.bf16.mxu1 %v1185_v2  ;;  %v290_v7 = vld [vmem:[%s1310_s2] sm:$0xff]  ;;  %v1193_v11 = vld [vmem:[%s1309_s0 + $0x8] sm:$0xff]   ;;  %vm375_vm0 = vcmp.ne.s32.totalorder %v1270_v13, %v1272_v14  ;;  %v1196_v36 = vld [vmem:[%s1309_s0 + $0x10] sm:$0xff]   ;;  %vm1064_vm10 = vcmp.eq.s32.totalorder %v1272_v14, 0  ;;  %vm1067_vm11 = vcmp.eq.s32.totalorder %v1270_v13, 1  ;;  %vm1065_vm12 = vcmp.eq.s32.totalorder %v1270_v13, 0 }
   0x5   :  { %1144 = vmatprep.mubr.bf16.mxu0 %v1192_v5  ;;  %308 = vperm.xlu0 %1183, %v290_v7   ;;  %v1095_v15 = vld [vmem:[%s1311_s3] ss:$0 sm:$0xff]  ;;  %v1195_v35 = vld [vmem:[%s1309_s0 + $0x28] sm:$0xff]   ;;  %v1197_v37 = vld [vmem:[%s1309_s0 + $0x30] sm:$0xff]  }
   0x6   :  { %v1078_v17 = vld [vmem:[%s1312_s4] ss:$0 sm:$0xff]  ;;  %v1198_v38 = vld [vmem:[%s1309_s0 + $0x18] sm:$0xff]   ;;  %vm1068_vm13 = vmand %vm1064_vm10, %vm1067_vm11 }
   0x7   :  { %1131 = vmatpush3.bf16.msra.mxu0 %v1185_v2  ;;  %1169 = vmatpush3.bf16.msra.mxu1 %v1185_v2  ;;  %v1194_v34 = vld [vmem:[%s1309_s0 + $0x20] sm:$0xff]   ;;  %v1199_v39 = vld [vmem:[%s1309_s0 + $0x38] sm:$0xff]   ;;  %vm1066_vm14 = vmand %vm1064_vm10, %vm1065_vm12 }
   0x8   :  { %1132 = vmatprep.subr.bf16.mxu0 %v1186_v3  ;;  %1162 = vmatprep.subr.bf16.mxu1 %v1186_v3 }
   0x9   :  { %1152 = vmatprep.mubr.bf16.mxu1 %v1194_v34 }
   0xb   :  { %1133 = vmatpush3.bf16.msra.mxu0 %v1186_v3  ;;  %1170 = vmatpush3.bf16.msra.mxu1 %v1186_v3 }
   0xc   :  { %1134 = vmatprep.subr.bf16.mxu0 %v1187_v4  ;;  %1163 = vmatprep.subr.bf16.mxu1 %v1187_v4 }
   0xf   :  { %1135 = vmatpush3.bf16.msra.mxu0 %v1187_v4  ;;  %1171 = vmatpush3.bf16.msra.mxu1 %v1187_v4 }
  0x10   :  { %1136 = vmatprep.subr.bf16.mxu0 %v1188_v6  ;;  %1164 = vmatprep.subr.bf16.mxu1 %v1188_v6 }
  0x13   :  { %1137 = vmatpush3.bf16.msra.mxu0 %v1188_v6  ;;  %1172 = vmatpush3.bf16.msra.mxu1 %v1188_v6 }
  0x14   :  { %1138 = vmatprep.subr.bf16.mxu0 %v1189_v8  ;;  %1165 = vmatprep.subr.bf16.mxu1 %v1189_v8 }
  0x17   :  { %1139 = vmatpush3.bf16.msra.mxu0 %v1189_v8  ;;  %1173 = vmatpush3.bf16.msra.mxu1 %v1189_v8 }
  0x18   :  { %1140 = vmatprep.subr.bf16.mxu0 %v1190_v9  ;;  %1166 = vmatprep.subr.bf16.mxu1 %v1190_v9 }
  0x1b   :  { %1141 = vmatpush3.bf16.msra.mxu0 %v1190_v9  ;;  %1174 = vmatpush3.bf16.msra.mxu1 %v1190_v9 }
  0x1c   :  { %1142 = vmatprep.subr.bf16.mxu0 %v1191_v10  ;;  %1167 = vmatprep.subr.bf16.mxu1 %v1191_v10 }
  0x1f   :  { %1143 = vmatpush3.bf16.msra.mxu0 %v1191_v10  ;;  %1175 = vmatpush3.bf16.msra.mxu1 %v1191_v10 }
  0x22   :  { %1145 = vmatmul.mubr.bf16.vlgmr.msra.gmra.mrb[0].mxu0 %v1193_v11  ;;  %1153 = vmatmul.mubr.bf16.vlgmr.msra.gmra.mrb[0].mxu1 %v1195_v35 }
  0x23   :  { %1148 = vmatprep.mubr.bf16.mxu0 %v1196_v36  ;;  %1156 = vmatprep.mubr.bf16.mxu1 %v1197_v37 }
  0x2a   :  { %1149 = vmatmul.mubr.bf16.gmra.mrb[4].mxu0 %v1198_v38  ;;  %1157 = vmatmul.mubr.bf16.gmra.mrb[4].mxu1 %v1199_v39 }
  0x84   :  { %v309_v16 = vpop.permute.xlu0 %308 }
  0x85   :  { %vm359_vm1 = vcmp.eq.s32.totalorder %v309_v16, %v1095_v15 }
  0x86   :  { %vm391_vm2 = vmand %vm359_vm1, %vm375_vm0 }
  0x87   :  { %vm407_vm4 = vmxor %vm359_vm1, %vm1205_vm3 }
  0xf5   :  { %v1146_v18 = vpop.f32.mrb[0].mxu0  ;;  %v1154_v54 = vpop.f32.mrb[0].mxu1 }
  0xf6   :  { %v190_v19 = vpop.f32.mrb[1].mxu0  ;;  %v222_v55 = vpop.f32.mrb[1].mxu1 }
  0xf7   :  { %v191_v20 = vadd.f32 %v1078_v17, %v190_v19  ;;  %v1147_v21 = vpop.f32.mrb[2].mxu0  ;;  %v1155_v56 = vpop.f32.mrb[2].mxu1 }
  0xf8   :  { %v193_v22 = vpop.f32.mrb[3].mxu0  ;;  %v225_v57 = vpop.f32.mrb[3].mxu1 }
  0xf9   :  { %v439_v23 = vsel %vm407_vm4, %v191_v20, -1e+30  ;;  %v423_v24 = vsel %vm391_vm2, %v191_v20, 1e+30 }
  0xfa   :  { %487 = vmax.xlane.f32.xlu1 %v439_v23  ;;  %455 = vmin.xlane.f32.xlu0 %v423_v24 }
  0xfd   :  { %v1150_v58 = vpop.f32.mrb[4].mxu0  ;;  %v1158_v59 = vpop.f32.mrb[4].mxu1 }
  0xfe   :  { %v206_v60 = vpop.f32.mrb[5].mxu0  ;;  %v238_v61 = vpop.f32.mrb[5].mxu1 }
  0xff   :  { %v1151_v62 = vpop.f32.mrb[6].mxu0  ;;  %v1159_v63 = vpop.f32.mrb[6].mxu1 }
 0x100   :  { %v209_v0 = vpop.f32.mrb[7].mxu0  ;;  %v241_v1 = vpop.f32.mrb[7].mxu1 }
 0x187   :  { %v488_v25 = vpop.xlane.xlu1 %487  ;;  %v456_v26 = vpop.xlane.xlu0 %455 }
 0x188   :  { %v519_v27 = vadd.f32 0.1, %v488_v25  ;;  %v1096_v28 = vadd.f32 -0.1, %v456_v26 }
 0x18a   :  { %vm535_vm5 = vcmp.lt.f32.partialorder %v423_v24, %v519_v27  ;;  %vm567_vm6 = vcmp.gt.f32.partialorder %v439_v23, %v1096_v28 }
 0x18b   :  { %v583_v30 = vsel %vm535_vm5, 1.0, %v1206_v29  ;;  %v631_v31 = vsel %vm567_vm6, 1.0, %v1206_v29  ;;  %v679_v32 = vsel %vm535_vm5, %v423_v24, 0.0  ;;  %v727_v33 = vsel %vm567_vm6, %v439_v23, 0.0 }
 0x18c   :  { %599 = vadd.xlane.f32.xlu1 %v583_v30 }
 0x190   :  { %647 = vadd.xlane.f32.xlu1 %v631_v31 }
 0x194   :  { %695 = vadd.xlane.f32.xlu1 %v679_v32 }
 0x198   :  { %743 = vadd.xlane.f32.xlu1 %v727_v33 }
 0x219   :  { %v600_v40 = vpop.xlane.xlu1 %599 }
 0x21a   :  { %1200 = vrcp.f32 %v600_v40 }
 0x21d   :  { %v648_v41 = vpop.xlane.xlu1 %647 }
 0x21e   :  { %1202 = vrcp.f32 %v648_v41  ;;  %vm871_vm7 = vcmp.gt.f32.partialorder %v648_v41, 0.5 }
 0x21f   :  { %vm919_vm8 = vmxor %vm871_vm7, %vm1205_vm3 }
 0x220   :  { %v1008_v52 = vsel %vm919_vm8, 1.0, %v1206_v29 }
 0x221   :  { %v696_v42 = vpop.xlane.xlu1 %695  ;;  %v1024_v53 = vsel %vm967_vm9, %v1008_v52, 0.0 }
 0x222   :  { %v775_v43 = vsub.f32 %v600_v40, %v696_v42 }
 0x224   :  { %v1201_v44 = vpop.eup %1200 }
 0x225   :  { %v744_v46 = vpop.xlane.xlu1 %743  ;;  %v792_v47 = vmul.f32 %v1201_v44, %v775_v43 }
 0x228   :  { %v1203_v45 = vpop.eup %1202 }
 0x229   :  { %v824_v48 = vmul.f32 %v1203_v45, %v744_v46 }
 0x22b   :  { %v855_v49 = vadd.f32 %v824_v48, %v792_v47 }
 0x22d   :  { %v951_v50 = vsel %vm871_vm7, %v855_v49, 0.0 }
 0x22e   :  { %v968_v51 = vsel %vm967_vm9, %v951_v50, 0.0 }
 0x22f   :  { %999 = vadd.xlane.f32.xlu1 %v968_v51 }
 0x233   :  { %1055 = vadd.xlane.f32.xlu1 %v1024_v53 }
 0x2bc   :  { %v1000_v2 = vpop.xlane.xlu1 %999 }
 0x2bd   :  { %v1001_v3 = vrot.slane %v1000_v2, 4 }
 0x2bf   :  { %v1002_v4 = vadd.f32 %v1001_v3, %v1000_v2 }
 0x2c0   :  { %v1056_v5 = vpop.xlane.xlu1 %1055 }
 0x2c1   :  { %v1003_v6 = vrot.slane %v1002_v4, 2  ;;  %v1057_v7 = vrot.slane %v1056_v5, 4 }
 0x2c3   :  { %v1058_v8 = vadd.f32 %v1057_v7, %v1056_v5  ;;  %v1004_v9 = vadd.f32 %v1003_v6, %v1002_v4 }
 0x2c5   :  { %v1059_v10 = vrot.slane %v1058_v8, 2  ;;  %v1005_v11 = vrot.slane %v1004_v9, 1 }
 0x2c7   :  { %v1060_v12 = vadd.f32 %v1059_v10, %v1058_v8  ;;  %v1006_v15 = vadd.f32 %v1005_v11, %v1004_v9 }
 0x2c9   :  { %1176 = vpush %v1006_v15  ;;  %v1061_v16 = vrot.slane %v1060_v12, 1 }
 0x2cb   :  { %v1062_v17 = vadd.f32 %v1061_v16, %v1060_v12 }
 0x2cd   :  { %1178 = vpush %v1062_v17 }
 0x2fa   :  { %s1177_s0 = spop %1176 }
 0x2fb   :  { %v1071_v19 = vstv %s1177_s0 }
 0x2fe   :  { %s1179_s27 = spop %1178 }
 0x2ff   :  { %v1069_v18 = vstv %s1179_s27 }
 0x300   :  { %v1070_v20 = vsel %vm1068_vm13, %v1069_v18, 0.0 }
 0x301   :  { %v1072_v21 = vsel %vm1066_vm14, %v1071_v19, %v1070_v20 }
 0x302   :  { %1073 = vst [vmem:[%s1313_s5] sm:$0xff] %v1072_v21 }

</bundles_post_ra>
